<compile_context>
chip_gen: v6e
topology: v6e:2x2x1
jax: 0.10.0
libtpu: 0.0.40
codegen_flags: <defaults>
</compile_context>

<pallas_src>
import jax
import jax.numpy as jnp
from jax.experimental import pallas as pl
from jax.experimental.pallas import tpu as pltpu


def _round_up(n, m):
    return ((n + m - 1) // m) * m


def _sublane_multiple(dtype):
    # Sub-32-bit dtypes pack along sublanes.
    return {4: 8, 2: 16, 1: 32}.get(jnp.dtype(dtype).itemsize, 8)


def _soft_gating_kernel(w_ref, x_ref, o_ref):
    # w_ref: (TM, 1)   x_ref, o_ref: (TM, TS).  Compute in f32 (torch-style
    # promotion of f32 params against possibly-bf16 activations).
    w = w_ref[...].astype(jnp.float32)
    x = x_ref[...].astype(jnp.float32)
    o_ref[...] = (w * x).astype(o_ref.dtype)


def _soft_gating_bias_kernel(w_ref, b_ref, x_ref, o_ref):
    w = w_ref[...].astype(jnp.float32)
    b = b_ref[...].astype(jnp.float32)
    x = x_ref[...].astype(jnp.float32)
    o_ref[...] = (w * x + b).astype(o_ref.dtype)


# Target ~8 MiB per x/out tile (measured streaming kernels hit ~85-86% of HBM
# roofline at this size); double-buffered x + out stays ~32 MiB live.
_MAX_TILE_BYTES = 8 << 20

# Below a few MiB the pallas_call launch/step overhead dominates; XLA's fused
# broadcast-multiply is already optimal.
_SMALL_INPUT_BYTES = 4 << 20


def _vmem_limit_bytes():
    """Generation-aware scoped-VMEM cap: <=48 MiB on v7x (64 MiB/TC),
    64 MiB on v5e/v6e (128 MiB physical)."""
    try:
        cap = int(getattr(pltpu.get_tpu_info(), "vmem_capacity_bytes", 128 << 20))
    except Exception:
        cap = 128 << 20
    return (48 << 20) if cap <= (64 << 20) else (64 << 20)


def soft_gating(x, weight, bias=None, *, force_pallas=False, donate_x=False):
    """
    x      : (B, C, *spatial)  NCHW-style layout (channel axis = 1)
    weight : (1, C, 1, ..., 1) learnable channel-wise scale (f32)
    bias   : (1, C, 1, ..., 1) or None
    returns: y = weight * x (+ bias), dtype = result_type(x, weight[, bias])
    donate_x: alias the x input buffer with the output (only when dtypes match)
              to avoid allocating a second MxS HBM buffer.
    """
    orig_shape = x.shape
    B, C = orig_shape[0], orig_shape[1]
    S = 1
    for d in orig_shape[2:]:
        S *= d
    M = B * C

    dtypes = [x.dtype, weight.dtype] + ([bias.dtype] if bias is not None else [])
    out_dtype = jnp.result_type(*dtypes)

    # ---- small-input fast path ----
    if not force_pallas and x.size * jnp.dtype(x.dtype).itemsize < _SMALL_INPUT_BYTES:
        y = weight * x
        if bias is not None:
            y = y + bias
        return y.astype(out_dtype)

    # ---- flatten to a lane/sublane-dense 2D problem ----
    x2 = x.reshape(M, S)
    # One f32 scalar per (batch, channel) row; tiny array, negligible HBM read.
    w2 = jnp.broadcast_to(weight.reshape(1, C).astype(jnp.float32), (B, C)).reshape(M, 1)

    sub = max(_sublane_multiple(x.dtype), _sublane_multiple(out_dtype))
    bytes_per_elem = max(jnp.dtype(x.dtype).itemsize, jnp.dtype(out_dtype).itemsize)

    S128 = _round_up(S, 128)
    row_bytes = S128 * bytes_per_elem

    if sub * row_bytes <= _MAX_TILE_BYTES:
        # Whole (padded) row fits: one contiguous HBM transfer per block,
        # no S grid axis.
        TS = S128
        TM = max(sub, (_MAX_TILE_BYTES // row_bytes) // sub * sub)
        TM = min(TM, _round_up(M, sub))
    else:
        # Very wide rows: tile both axes, ~8 MiB blocks.
        TM = min(256, _round_up(M, sub))
        ts_budget = max(128, (_MAX_TILE_BYTES // (TM * bytes_per_elem)) // 128 * 128)
        TS = min(ts_budget, S128)

    grid_m = pl.cdiv(M, TM)
    grid_s = pl.cdiv(S, TS)

    # v7x megacore: make sure both TensorCores get work when the grid would
    # otherwise collapse to a single tile (neutral on v5e/v6e).
    if grid_m * grid_s < 2 and M > sub:
        TM = _round_up(pl.cdiv(M, 2), sub)
        grid_m = pl.cdiv(M, TM)

    if grid_s == 1:
        grid = (grid_m,)
        x_spec = pl.BlockSpec((TM, TS), lambda i: (i, 0))
        o_spec = pl.BlockSpec((TM, TS), lambda i: (i, 0))
        w_spec = pl.BlockSpec((TM, 1), lambda i: (i, 0))
        sem = ("parallel",)
    else:
        grid = (grid_m, grid_s)
        x_spec = pl.BlockSpec((TM, TS), lambda i, j: (i, j))
        o_spec = pl.BlockSpec((TM, TS), lambda i, j: (i, j))
        w_spec = pl.BlockSpec((TM, 1), lambda i, j: (i, 0))
        sem = ("parallel", "parallel")

    out_shape = jax.ShapeDtypeStruct((M, S), out_dtype)
    cparams = pltpu.CompilerParams(
        dimension_semantics=sem,
        vmem_limit_bytes=_vmem_limit_bytes(),
    )

    if bias is not None:
        b2 = jnp.broadcast_to(bias.reshape(1, C).astype(jnp.float32), (B, C)).reshape(M, 1)
        in_arrays = (w2, b2, x2)
        in_specs = [w_spec, w_spec, x_spec]
        kernel = _soft_gating_bias_kernel
        x_index = 2
    else:
        in_arrays = (w2, x2)
        in_specs = [w_spec, x_spec]
        kernel = _soft_gating_kernel
        x_index = 1

    io_aliases = {}
    if donate_x and out_dtype == x.dtype:
        io_aliases = {x_index: 0}

    y2 = pl.pallas_call(
        kernel,
        out_shape=out_shape,
        grid=grid,
        in_specs=in_specs,
        out_specs=o_spec,
        compiler_params=cparams,
        input_output_aliases=io_aliases,
    )(*in_arrays)

    return y2.reshape(orig_shape)


def init_soft_gating_params(in_features, n_dim=2, use_bias=False):
    # Matches nn.Parameter(torch.ones(...)) / torch.zeros(...) init.
    shape = (1, in_features) + (1,) * n_dim
    weight = jnp.ones(shape, dtype=jnp.float32)
    bias = jnp.zeros(shape, dtype=jnp.float32) if use_bias else None
    return weight, bias


if __name__ == "__main__":
    key = jax.random.PRNGKey(0)
    B, C, H, W = 2, 4, 16, 16   # small NCHW input

    x = jax.random.normal(key, (B, C, H, W), dtype=jnp.float32)

    # ---- bias=False path (module default); force the Pallas path so the
    #      kernel itself is exercised even at this tiny size ----
    w, b = init_soft_gating_params(C, n_dim=2, use_bias=False)
    y = jax.block_until_ready(soft_gating(x, w, b, force_pallas=True))
    ref = w * x  # identity init -> equals x
    assert jnp.allclose(y, ref, atol=1e-6), "bias=False mismatch"

    # ---- bias=True path with perturbed params ----
    w2, b2 = init_soft_gating_params(C, n_dim=2, use_bias=True)
    kw, kb = jax.random.split(jax.random.PRNGKey(1))
    w2 = w2 + 0.1 * jax.random.normal(kw, w2.shape, dtype=jnp.float32)
    b2 = b2 + 0.1 * jax.random.normal(kb, b2.shape, dtype=jnp.float32)
    y2 = jax.block_until_ready(soft_gating(x, w2, b2, force_pallas=True))
    ref2 = w2 * x + b2
    assert jnp.allclose(y2, ref2, atol=1e-6), "bias=True mismatch"

    # ---- ragged shape (C not multiple of 8, S not multiple of 128) ----
    x3 = jax.random.normal(jax.random.PRNGKey(2), (2, 3, 7, 9), dtype=jnp.float32)
    w3, b3 = init_soft_gating_params(3, n_dim=2, use_bias=True)
    w3 = w3 + 0.05
    b3 = b3 - 0.02
    y3 = jax.block_until_ready(soft_gating(x3, w3, b3, force_pallas=True))
    assert jnp.allclose(y3, w3 * x3 + b3, atol=1e-6), "ragged-shape mismatch"

    # ---- bf16 activations, f32 params (torch-style promotion -> f32 out);
    #      also exercises the megacore grid split (M=128 -> 2 tiles) ----
    x4 = jax.random.normal(jax.random.PRNGKey(3), (2, 64, 16, 16), dtype=jnp.bfloat16)
    w4, b4 = init_soft_gating_params(64, n_dim=2, use_bias=True)
    w4 = w4 + 0.1 * jax.random.normal(jax.random.PRNGKey(4), w4.shape, dtype=jnp.float32)
    y4 = jax.block_until_ready(soft_gating(x4, w4, b4, force_pallas=True))
    ref4 = w4 * x4.astype(jnp.float32) + b4
    assert y4.dtype == jnp.float32, "promotion dtype mismatch"
    assert jnp.allclose(y4, ref4, atol=1e-6), "bf16 mismatch"

    # ---- fast path (auto, no Pallas) still matches ----
    y5 = jax.block_until_ready(soft_gating(x, w2, b2))
    assert jnp.allclose(y5, ref2, atol=1e-6), "fast-path mismatch"

    print("KERNEL_OK")
</pallas_src>

<mosaic_0001>
module attributes {stable_mosaic.version = 11 : i64} {
  func.func @_soft_gating_kernel(%arg0: i32, %arg1: memref<8x1xf32, #tpu.memory_space<vmem>>, %arg2: memref<8x256xf32, #tpu.memory_space<vmem>>, %arg3: memref<8x256xf32, #tpu.memory_space<vmem>>) attributes {dimension_semantics = [#tpu.dimension_semantics<parallel>], iteration_bounds = array<i64: 1>, scalar_prefetch = 0 : i64, scratch_operands = 0 : i64, tpu.core_type = #tpu.core_type<tc>, window_params = [{transform_indices = @transform_0, window_bounds = array<i64: 8, 1>}, {transform_indices = @transform_1, window_bounds = array<i64: 8, 256>}, {transform_indices = @transform_2, window_bounds = array<i64: 8, 256>}]} {
    %c0 = arith.constant 0 : index
    %c0_0 = arith.constant 0 : index
    %0 = vector.load %arg1[%c0, %c0_0] : memref<8x1xf32, #tpu.memory_space<vmem>>, vector<8x1xf32>
    %c0_1 = arith.constant 0 : index
    %c0_2 = arith.constant 0 : index
    %1 = vector.load %arg2[%c0_1, %c0_2] : memref<8x256xf32, #tpu.memory_space<vmem>>, vector<8x256xf32>
    %2 = vector.broadcast %0 : vector<8x1xf32> to vector<8x256xf32>
    %3 = arith.mulf %2, %1 : vector<8x256xf32>
    %c0_3 = arith.constant 0 : index
    %c0_4 = arith.constant 0 : index
    %4 = vector.load %arg3[%c0_3, %c0_4] : memref<8x256xf32, #tpu.memory_space<vmem>>, vector<8x256xf32>
    tpu.vector_store %arg3[%c0_3, %c0_4], %3 {strides = array<i32>} : memref<8x256xf32, #tpu.memory_space<vmem>>, vector<8x256xf32>,
    return
  }
  func.func @transform_0(%arg0: i32) -> (i32, i32) {
    %c0_i32 = arith.constant 0 : i32
    %c0_i32_0 = arith.constant 0 : i32
    return %arg0, %c0_i32 : i32, i32
  }
  func.func @transform_1(%arg0: i32) -> (i32, i32) {
    %c0_i32 = arith.constant 0 : i32
    %c0_i32_0 = arith.constant 0 : i32
    return %arg0, %c0_i32 : i32, i32
  }
  func.func @transform_2(%arg0: i32) -> (i32, i32) {
    %c0_i32 = arith.constant 0 : i32
    %c0_i32_0 = arith.constant 0 : i32
    return %arg0, %c0_i32 : i32, i32
  }
}

</mosaic_0001>

<bundles_post_ra>
// kernel: tpu_custom_call.1
= control target key start
LH: loop header
LB: loop body
LE: loop exit
PB: predicated region body
PF: predicated region fallthrough
CT: control target
= control target key end

     0   :  { %7 = vsyncpa [#allocation3], 0  ;;  %s126_s0 = inlined_call_operand.vmem [shape: f32[8,1], index: 0, kind: input, shape index: {}]   ;;  %s127_s1 = inlined_call_operand.hbm [shape: f32[8,256], index: 1, kind: input, shape index: {}]   ;;  %s128_s2 = inlined_call_operand.hbm [shape: f32[8,256], index: 2, kind: output, shape index: {}]  }
   0x1   :  { %8 = vsyncpa [#allocation4], 0  ;;  %s99_s9 = smov [#allocation2]  }
   0x2   :  { %s17_s10 = sshll.u32 %s99_s9, 4  ;;  %s18_s10 = int_to_ptr.vmem [resolvable:$true] %s17_s10 }
   0x3   :  { %s63_s11 = scalar_lea.vmem %s18_s10, 256  ;;  %p68_p1 = scmp.lt.s32.totalorder %s18_s10, %s18_s10 }
   0x4   :  { %p64_p0 = scmp.ne.s32.totalorder %s18_s10, %s63_s11  ;;  %p69_p2 = scmp.lt.s32.totalorder %s63_s11, %s63_s11 }
   0x6   :  { %p70_p3 = por %p69_p2, %p68_p1 }
   0x8   :  { %p71_p4 = pnand %p70_p3, %p64_p0 }
   0xa   :  { %74 = shalt.err (!%p71_p4)
}
   0xb   :  { %20 = dma.hbm_to_vmem [thread:$0]  %s127_s1, 256, %s18_s10, [#allocation3]  }
   0xc   :  { %95 = dma.done.wait [#allocation3], 256  }
   0xd   :  { %96 = vsyncadd [#allocation3], 4294967040  ;;  %v100_v0 = vmov 0   ;;  %v24_v1 = vld [vmem:[%s126_s0] sm:$0xff]  ;;  %v26_v3 = vld [vmem:[#allocation2 + $0x8] sm:$0xff]  ;;  %s101_s16 = smov [#allocation5]  }
   0xe   :  { %54 = vset.pattern.permute.xlu0 %v100_v0  ;;  %v25_v2 = vld [vmem:[#allocation2] sm:$0xff]  ;;  %s42_s17 = sshll.u32 %s101_s16, 4  ;;  %s43_s17 = int_to_ptr.vmem [resolvable:$true] %s42_s17 }
   0xf   :  { %29 = vperm.xlu0 %54, %v24_v1   ;;  %s75_s1 = scalar_lea.vmem %s43_s17, 256  ;;  %p80_p6 = scmp.lt.s32.totalorder %s43_s17, %s43_s17 }
  0x10   :  { %p76_p5 = scmp.ne.s32.totalorder %s43_s17, %s75_s1  ;;  %p81_p7 = scmp.lt.s32.totalorder %s75_s1, %s75_s1 }
  0x12   :  { %p82_p8 = por %p81_p7, %p80_p6 }
  0x14   :  { %p83_p9 = pnand %p82_p8, %p76_p5 }
  0x8a   :  { %v30_v4 = vpop.permute.xlu0 %29 }
  0x8b   :  { %v32_v5 = vmul.f32 %v30_v4, %v25_v2  ;;  %v33_v6 = vmul.f32 %v30_v4, %v26_v3 }
  0x8d   :  { %34 = vst [vmem:[#allocation5] sm:$0xff] %v32_v5  ;;  %35 = vst [vmem:[#allocation5 + $0x8] sm:$0xff] %v33_v6 }
  0x8e   :  { %86 = shalt.err (!%p83_p9)
}
  0x8f   :  { %45 = dma.vmem_to_hbm [thread:$0]  %s43_s17, 256, %s128_s2, [#allocation4]  }
  0x90   :  { %97 = dma.done.wait [#allocation4], 256  }
  0x91   :  { %98 = vsyncadd [#allocation4], 4294967040 }
  0x92   :  { %49 = vsyncpa [#allocation3], 1 }
  0x93   :  { %50 = vsyncpa [#allocation4], 1 }

</bundles_post_ra>
